<compile_context>
chip_gen: v5e
topology: v5e:2x2
jax: 0.10.0
libtpu: 0.0.40
codegen_flags: <defaults>
</compile_context>

<pallas_src>
import functools

import jax
import jax.numpy as jnp
from jax import lax
from jax.experimental import pallas as pl
from jax.experimental.pallas import tpu as pltpu

_LANE = 128
_NEG_PAD = -1e30  # exp underflows to 0; never selected by max in practice


def _cdiv(a, b):
    return -(-a // b)


def _round_up(x, m):
    return _cdiv(x, m) * m


def _round_down(x, m):
    return (x // m) * m


def _label_smoothing_kernel(x_ref, lse_ref, ks_ref, m_sc, l_sc, ks_sc, *,
                            keep_index, num_classes, num_class_blocks):
    """Streams logits; emits per-row log-sum-exp and sum over [0, keep_index)."""
    tb, tc = x_ref.shape
    x = x_ref[...].astype(jnp.float32)

    if num_class_blocks == 1:
        # Preferred path: single full-width class block (tc == C).  No online
        # rescale, no scratch read-modify-writes, no ragged-column mask.
        m = jnp.max(x, axis=-1, keepdims=True)
        lse_ref[...] = m + jnp.log(jnp.sum(jnp.exp(x - m), axis=-1, keepdims=True))
        if keep_index >= num_classes:
            ks_ref[...] = jnp.sum(x, axis=-1, keepdims=True)
        else:
            col = lax.broadcasted_iota(jnp.int32, (tb, tc), 1)
            ks_ref[...] = jnp.sum(jnp.where(col < keep_index, x, 0.0),
                                  axis=-1, keepdims=True)
        return

    # ---------------- streaming multi-class-tile path ----------------
    j = pl.program_id(1)
    nj = num_class_blocks

    @pl.when(j == 0)
    def _init():
        m_sc[...] = jnp.full_like(m_sc, _NEG_PAD)
        l_sc[...] = jnp.zeros_like(l_sc)
        ks_sc[...] = jnp.zeros_like(ks_sc)

    def _lse_update(xv):
        m_prev = m_sc[...]
        m_new = jnp.maximum(m_prev, jnp.max(xv, axis=-1, keepdims=True))
        l_sc[...] = (l_sc[...] * jnp.exp(m_prev - m_new)
                     + jnp.sum(jnp.exp(xv - m_new), axis=-1, keepdims=True))
        m_sc[...] = m_new

    if num_classes % tc != 0:
        # Only the ragged last class tile masks its garbage columns.
        @pl.when(j == nj - 1)
        def _lse_ragged():
            col = j * tc + lax.broadcasted_iota(jnp.int32, (tb, tc), 1)
            _lse_update(jnp.where(col < num_classes, x, _NEG_PAD))

        @pl.when(j != nj - 1)
        def _lse_full():
            _lse_update(x)
    else:
        _lse_update(x)

    # Keep-support sum: tiles fully inside [0, keep_index) do a plain sum; only
    # the single straddling tile builds the iota mask (keep_index <= C, so the
    # mask also excludes any ragged garbage columns); tiles past it do nothing.
    tile_lo = j * tc
    tile_hi = tile_lo + tc

    @pl.when(tile_hi <= keep_index)
    def _inside():
        ks_sc[...] += jnp.sum(x, axis=-1, keepdims=True)

    @pl.when(jnp.logical_and(tile_lo < keep_index, tile_hi > keep_index))
    def _straddle():
        col = tile_lo + lax.broadcasted_iota(jnp.int32, (tb, tc), 1)
        ks_sc[...] += jnp.sum(jnp.where(col < keep_index, x, 0.0),
                              axis=-1, keepdims=True)

    @pl.when(j == nj - 1)
    def _finalize():
        lse_ref[...] = m_sc[...] + jnp.log(l_sc[...])
        ks_ref[...] = ks_sc[...]


def label_smoothing_loss(output, target, *, label_smoothing, tgt_size, keep_index,
                         block_rows=None, block_cols=None,
                         vmem_limit_bytes=48 * 1024 * 1024):
    """output: (B, tgt_size) float (f32 or bf16); target: (B,) int.

    Returns the scalar float32 label-smoothed loss matching the PyTorch module.
    block_rows/block_cols optionally cap tile sizes (mainly for testing).
    """
    assert 0.0 < label_smoothing <= 1.0
    assert keep_index > 1, "smoothing_value = label_smoothing/(keep_index-1)"
    B, C = output.shape
    assert C == tgt_size and 0 < keep_index <= tgt_size
    smoothing_value = label_smoothing / (keep_index - 1)
    confidence = 1.0 - label_smoothing

    itemsize = jnp.dtype(output.dtype).itemsize
    # native sublane packing: f32 -> 8 rows, bf16 -> 16, int8/fp8 -> 32
    sublane = (32 // itemsize) if itemsize < 4 else 8

    # VMEM budget: 2x double-buffered input tile + ~3 full-tile f32 temporaries
    # (f32 cast, exp(x-m), select) must fit under the scoped limit w/ headroom.
    usable = int(vmem_limit_bytes * 0.85)
    max_tile_elems = max(sublane * _LANE, usable // (2 * itemsize + 12))

    # ---- class tile: prefer full-width C (best DMA, no online-LSE rescale) ----
    want_full_c = block_cols is None or block_cols >= C
    full_c_fits = sublane * C <= max_tile_elems
    if want_full_c and full_c_fits:
        tc = C
    else:
        if block_cols is not None:
            tc = max(_LANE, _round_down(block_cols, _LANE))
        else:
            tc = max(_LANE, _round_down(max_tile_elems // sublane, _LANE))
        tc = min(tc, _round_up(C, _LANE))
        if tc >= C:
            tc = C

    # ---- batch (row) tile: grow until the per-buffer budget is actually used ----
    tb = max(sublane, _round_down(max_tile_elems // tc, sublane))
    if block_rows is not None:
        tb = min(tb, max(sublane, _round_down(block_rows, sublane)))
    tb = min(tb, _round_up(B, sublane))

    nb, nc = _cdiv(B, tb), _cdiv(C, tc)

    kernel = functools.partial(
        _label_smoothing_kernel,
        keep_index=keep_index, num_classes=C, num_class_blocks=nc)

    lse, ks = pl.pallas_call(
        kernel,
        out_shape=(jax.ShapeDtypeStruct((B, 1), jnp.float32),
                   jax.ShapeDtypeStruct((B, 1), jnp.float32)),
        grid_spec=pltpu.PrefetchScalarGridSpec(
            num_scalar_prefetch=0,
            grid=(nb, nc),
            in_specs=[pl.BlockSpec((tb, tc), lambda i, j: (i, j))],
            out_specs=[pl.BlockSpec((tb, 1), lambda i, j: (i, 0)),
                       pl.BlockSpec((tb, 1), lambda i, j: (i, 0))],
            scratch_shapes=[pltpu.VMEM((tb, 1), jnp.float32)] * 3),
        compiler_params=pltpu.CompilerParams(
            dimension_semantics=("parallel", "arbitrary"),
            vmem_limit_bytes=vmem_limit_bytes),
    )(output)

    # Target-logit correction outside the kernel: a B-element gather plus (B,1)
    # arithmetic — negligible traffic, removes all target handling from the
    # streaming loop.  Matches PyTorch's scatter_ semantics exactly:
    #   per_row = sum(model_prob)*lse - [sv*sum_{c<keep} x_c + (conf - sv_at_t)*x_t]
    t = target.astype(jnp.int32).reshape(B, 1)
    x_t = jnp.take_along_axis(output, t, axis=-1).astype(jnp.float32)
    smooth_at_t = jnp.where(t < keep_index, jnp.float32(smoothing_value),
                            jnp.float32(0.0))
    prob_sum = smoothing_value * keep_index + confidence - smooth_at_t
    per_row = prob_sum * lse - (smoothing_value * ks
                                + (confidence - smooth_at_t) * x_t)
    return jnp.sum(per_row) / B


def _reference(output, target, *, label_smoothing, tgt_size, keep_index):
    """Pure-JAX reference mirroring the PyTorch forward exactly."""
    smoothing_value = label_smoothing / (keep_index - 1)
    confidence = 1.0 - label_smoothing
    one_hot = jnp.full((tgt_size,), smoothing_value, dtype=jnp.float32)
    one_hot = one_hot.at[keep_index:tgt_size].set(0.0)
    B = target.shape[0]
    model_prob = jnp.tile(one_hot[None, :], (B, 1))
    model_prob = model_prob.at[jnp.arange(B), target].set(confidence)
    logp = jax.nn.log_softmax(output.astype(jnp.float32), axis=-1)
    return -(logp * model_prob).sum(axis=-1).mean()


if __name__ == "__main__":
    # Small shapes consistent with the module's forward:
    # output: batch_size x n_classes, target: batch_size (class indices).
    # 20 % 8 != 0 exercises ragged batch tiles; 200 % 128 != 0 exercises the
    # ragged class tile of the streaming path.
    label_smoothing = 0.1
    tgt_size = 200
    keep_index = 150
    batch = 20

    key = jax.random.PRNGKey(0)
    k_out, k_tgt = jax.random.split(key)
    output = jax.random.normal(k_out, (batch, tgt_size), dtype=jnp.float32)
    target = jax.random.randint(k_tgt, (batch,), 0, tgt_size, dtype=jnp.int32)

    ref = _reference(output, target, label_smoothing=label_smoothing,
                     tgt_size=tgt_size, keep_index=keep_index)

    # Default auto-sized tiling: full-width class block, single-pass LSE.
    loss = label_smoothing_loss(
        output, target,
        label_smoothing=label_smoothing, tgt_size=tgt_size, keep_index=keep_index)
    loss = jax.block_until_ready(loss)
    assert jnp.allclose(loss, ref, rtol=1e-5, atol=1e-5), (loss, ref)

    # Forced small tiles -> (3 batch blocks x 2 class blocks): exercises the
    # online LSE across class tiles, the ragged class-tile mask, the straddling
    # keep-support tile, and ragged batch blocks — all without host padding.
    loss2 = label_smoothing_loss(
        output, target,
        label_smoothing=label_smoothing, tgt_size=tgt_size, keep_index=keep_index,
        block_rows=8, block_cols=128)
    loss2 = jax.block_until_ready(loss2)
    assert jnp.allclose(loss2, ref, rtol=1e-5, atol=1e-5), (loss2, ref)

    # bf16 logits: halves HBM read traffic; row tile aligned to the 16-row
    # native bf16 sublane packing.
    output_bf16 = output.astype(jnp.bfloat16)
    ref_bf16 = _reference(output_bf16, target, label_smoothing=label_smoothing,
                          tgt_size=tgt_size, keep_index=keep_index)
    loss3 = label_smoothing_loss(
        output_bf16, target,
        label_smoothing=label_smoothing, tgt_size=tgt_size, keep_index=keep_index)
    loss3 = jax.block_until_ready(loss3)
    assert jnp.allclose(loss3, ref_bf16, rtol=1e-4, atol=1e-4), (loss3, ref_bf16)

    print("KERNEL_OK")
</pallas_src>

<mosaic_0001>
module attributes {stable_mosaic.version = 11 : i64} {
  func.func @_label_smoothing_kernel(%arg0: i32, %arg1: i32, %arg2: memref<24x200xf32, #tpu.memory_space<vmem>>, %arg3: memref<24x1xf32, #tpu.memory_space<vmem>>, %arg4: memref<24x1xf32, #tpu.memory_space<vmem>>, %arg5: memref<24x1xf32, #tpu.memory_space<vmem>>, %arg6: memref<24x1xf32, #tpu.memory_space<vmem>>, %arg7: memref<24x1xf32, #tpu.memory_space<vmem>>) attributes {dimension_semantics = [#tpu.dimension_semantics<parallel>, #tpu.dimension_semantics<arbitrary>], iteration_bounds = array<i64: 1, 1>, scalar_prefetch = 0 : i64, scratch_operands = 3 : i64, tpu.core_type = #tpu.core_type<tc>, window_params = [{transform_indices = @transform_0, window_bounds = array<i64: 24, 200>}, {transform_indices = @transform_1, window_bounds = array<i64: 24, 1>}, {transform_indices = @transform_2, window_bounds = array<i64: 24, 1>}]} {
    %c0 = arith.constant 0 : index
    %c0_0 = arith.constant 0 : index
    %0 = vector.load %arg2[%c0, %c0_0] : memref<24x200xf32, #tpu.memory_space<vmem>>, vector<24x200xf32>
    %cst = arith.constant dense<0xFF800000> : vector<24xf32>
    %1 = vector.multi_reduction <maximumf>, %0, %cst [1] : vector<24x200xf32> to vector<24xf32>
    %2 = vector.shape_cast %1 : vector<24xf32> to vector<24x1xf32>
    %3 = vector.broadcast %2 : vector<24x1xf32> to vector<24x200xf32>
    %4 = arith.subf %0, %3 : vector<24x200xf32>
    %5 = math.exp %4 : vector<24x200xf32>
    %cst_1 = arith.constant dense<0.000000e+00> : vector<24xf32>
    %6 = vector.multi_reduction <add>, %5, %cst_1 [1] : vector<24x200xf32> to vector<24xf32>
    %7 = vector.shape_cast %6 : vector<24xf32> to vector<24x1xf32>
    %8 = math.log %7 : vector<24x1xf32>
    %9 = arith.addf %2, %8 : vector<24x1xf32>
    %c0_2 = arith.constant 0 : index
    %c0_3 = arith.constant 0 : index
    %10 = vector.load %arg3[%c0_2, %c0_3] : memref<24x1xf32, #tpu.memory_space<vmem>>, vector<24x1xf32>
    tpu.vector_store %arg3[%c0_2, %c0_3], %9 {strides = array<i32>} : memref<24x1xf32, #tpu.memory_space<vmem>>, vector<24x1xf32>,
    %11 = tpu.iota {dimensions = array<i32: 1>} : vector<24x200xi32>
    %c150_i32 = arith.constant 150 : i32
    %12 = vector.broadcast %c150_i32 : i32 to vector<24x200xi32>
    %13 = arith.cmpi slt, %11, %12 : vector<24x200xi32>
    %cst_4 = arith.constant 0.000000e+00 : f32
    %14 = vector.broadcast %cst_4 : f32 to vector<24x200xf32>
    %15 = arith.select %13, %0, %14 : vector<24x200xi1>, vector<24x200xf32>
    %cst_5 = arith.constant dense<0.000000e+00> : vector<24xf32>
    %16 = vector.multi_reduction <add>, %15, %cst_5 [1] : vector<24x200xf32> to vector<24xf32>
    %17 = vector.shape_cast %16 : vector<24xf32> to vector<24x1xf32>
    %c0_6 = arith.constant 0 : index
    %c0_7 = arith.constant 0 : index
    %18 = vector.load %arg4[%c0_6, %c0_7] : memref<24x1xf32, #tpu.memory_space<vmem>>, vector<24x1xf32>
    tpu.vector_store %arg4[%c0_6, %c0_7], %17 {strides = array<i32>} : memref<24x1xf32, #tpu.memory_space<vmem>>, vector<24x1xf32>,
    return
  }
  func.func @transform_0(%arg0: i32, %arg1: i32) -> (i32, i32) {
    %c0_i32 = arith.constant 0 : i32
    return %arg0, %arg1 : i32, i32
  }
  func.func @transform_1(%arg0: i32, %arg1: i32) -> (i32, i32) {
    %c0_i32 = arith.constant 0 : i32
    %c0_i32_0 = arith.constant 0 : i32
    return %arg0, %c0_i32 : i32, i32
  }
  func.func @transform_2(%arg0: i32, %arg1: i32) -> (i32, i32) {
    %c0_i32 = arith.constant 0 : i32
    %c0_i32_0 = arith.constant 0 : i32
    return %arg0, %c0_i32 : i32, i32
  }
}

</mosaic_0001>

<bundles_post_ra>
// kernel: tpu_custom_call.1
= control target key start
LH: loop header
LB: loop body
LE: loop exit
PB: predicated region body
PF: predicated region fallthrough
CT: control target
= control target key end

     0   :  { %8 = vsyncpa [#allocation6], 0  ;;  %s170_s12 = smov [#allocation5]   ;;  %s171_s14 = smov 256   ;;  %s237_s0 = inlined_call_operand.hbm [shape: f32[20,200], index: 0, kind: input, shape index: {}]   ;;  %s238_s1 = inlined_call_operand.vmem [shape: f32[20,1], index: 1, kind: output, shape index: {0}]   ;;  %s239_s2 = inlined_call_operand.vmem [shape: f32[20,1], index: 2, kind: output, shape index: {1}]  }
   0x1   :  { %s13_s11 = sshll.u32 %s237_s0, 4  ;;  %s15_s13 = sshll.u32 %s170_s12, 4  ;;  %s14_s11 = int_to_ptr.hbm [resolvable:$true] %s13_s11  ;;  %s16_s13 = int_to_ptr.vmem [resolvable:$true] %s15_s13 }
   0x2   :  { %s172_s15 = smov 16  }
   0x3   :  { %21 = dma.hbm_to_vmem [thread:$0]  %s14_s11, 768, %s16_s13, [#allocation6], %s171_s14, %s171_s14, %s172_s15  }
   0x4   :  { %168 = dma.done.wait [#allocation6], 768  }
   0x5   :  { %169 = vsyncadd [#allocation6], 4294966528  ;;  %vm32_vm0 = vcmask 588800   ;;  %v26_v0 = vld [vmem:[#allocation5] sm:$0xff]  ;;  %v27_v1 = vld [vmem:[#allocation5 + $0x8] sm:$0xff]  ;;  %v88_v13 = vlaneseq  ;;  %vm84_vm2 = vcmask 7168  }
   0x6   :  { %v33_v2 = vsel %vm32_vm0, %v27_v1, -inf  ;;  %v30_v3 = vld [vmem:[#allocation5 + $0x20] sm:$0xff]  ;;  %v31_v4 = vld [vmem:[#allocation5 + $0x28] sm:$0xff]  ;;  %v29_v6 = vld [vmem:[#allocation5 + $0x18] sm:$0xff] }
   0x7   :  { %v34_v5 = vmax.f32 %v26_v0, %v33_v2  ;;  %v41_v7 = vsel %vm32_vm0, %v31_v4, -inf  ;;  %v28_v9 = vld [vmem:[#allocation5 + $0x10] sm:$0xff]  ;;  %v37_v10 = vsel %vm32_vm0, %v29_v6, -inf  ;;  %v89_v16 = vand.u32 127, %v88_v13 }
   0x8   :  { %v42_v8 = vmax.f32 %v30_v3, %v41_v7  ;;  %v38_v11 = vmax.f32 %v28_v9, %v37_v10 }
   0x9   :  { %35 = vmax.xlane.f32.xlu0 %v34_v5  ;;  %v90_v19 = vadd.s32 128, %v89_v16 }
   0xa   :  { %43 = vmax.xlane.f32.xlu1 %v42_v8 }
   0xb   :  { %vm92_vm1 = vcmp.lt.s32.totalorder %v90_v19, 150 }
   0xc   :  { %v94_v21 = vsel %vm92_vm1, %v27_v1, 0.0  ;;  %v96_v36 = vsel %vm92_vm1, %v29_v6, 0.0  ;;  %v98_v48 = vsel %vm92_vm1, %v31_v4, 0.0 }
   0xd   :  { %v99_v24 = vsel %vm32_vm0, %v94_v21, 0.0  ;;  %v103_v38 = vsel %vm32_vm0, %v96_v36, 0.0  ;;  %v107_v49 = vsel %vm32_vm0, %v98_v48, 0.0 }
   0xe   :  { %v100_v27 = vadd.f32 %v99_v24, %v26_v0  ;;  %v104_v41 = vadd.f32 %v103_v38, %v28_v9  ;;  %v108_v50 = vadd.f32 %v107_v49, %v30_v3 }
  0x11   :  { %39 = vmax.xlane.f32.xlu0 %v38_v11 }
  0x19   :  { %101 = vadd.xlane.f32.xlu0 %v100_v27 }
  0x7c   :  { %v194_v12 = vpop.xlane.xlu0 %35 }
  0x7d   :  { %v45_v14 = vsub.f32 %v26_v0, %v194_v12  ;;  %v46_v15 = vsub.f32 %v27_v1, %v194_v12  ;;  %v198_v20 = vpop.xlane.xlu1 %43 }
  0x7e   :  { %v50_v23 = vsub.f32 %v31_v4, %v198_v20  ;;  %v49_v31 = vsub.f32 %v30_v3, %v198_v20 }
  0x7f   :  { %v51_v17 = vmul.f32 1.442695, %v45_v14  ;;  %v53_v18 = vmul.f32 1.442695, %v46_v15 }
  0x80   :  { %v61_v33 = vmul.f32 1.442695, %v50_v23  ;;  %v59_v37 = vmul.f32 1.442695, %v49_v31 }
  0x81   :  { %126 = vpow2.f32 %v51_v17 }
  0x82   :  { %128 = vpow2.f32 %v53_v18 }
  0x84   :  { %v40_v22 = vpop.xlane.xlu0 %39 }
  0x85   :  { %v47_v25 = vsub.f32 %v28_v9, %v40_v22  ;;  %v48_v26 = vsub.f32 %v29_v6, %v40_v22 }
  0x87   :  { %v127_v28 = vpop.eup %126  ;;  %v55_v29 = vmul.f32 1.442695, %v47_v25  ;;  %v57_v30 = vmul.f32 1.442695, %v48_v26 }
  0x88   :  { %v129_v32 = vpop.eup %128 }
  0x89   :  { %130 = vpow2.f32 %v55_v29  ;;  %v63_v34 = vsel %vm32_vm0, %v129_v32, 0.0 }
  0x8a   :  { %132 = vpow2.f32 %v57_v30  ;;  %v64_v35 = vadd.f32 %v127_v28, %v63_v34 }
  0x8b   :  { %134 = vpow2.f32 %v61_v33 }
  0x8c   :  { %65 = vadd.xlane.f32.xlu1 %v64_v35  ;;  %136 = vpow2.f32 %v59_v37  ;;  %v102_v51 = vpop.xlane.xlu0 %101 }
  0x8d   :  { %111 = vst.msk [vmem:[%s239_s2] sm:$0xff] %vm84_vm2, %v102_v51 }
  0x8f   :  { %v131_v39 = vpop.eup %130 }
  0x90   :  { %v133_v40 = vpop.eup %132 }
  0x91   :  { %v67_v42 = vsel %vm32_vm0, %v133_v40, 0.0  ;;  %v135_v43 = vpop.eup %134 }
  0x92   :  { %v68_v44 = vadd.f32 %v131_v39, %v67_v42  ;;  %v137_v45 = vpop.eup %136  ;;  %v71_v46 = vsel %vm32_vm0, %v135_v43, 0.0 }
  0x93   :  { %v72_v47 = vadd.f32 %v137_v45, %v71_v46 }
  0x94   :  { %69 = vadd.xlane.f32.xlu2 %v68_v44  ;;  %105 = vadd.xlane.f32.xlu1 %v104_v41 }
  0x9c   :  { %73 = vadd.xlane.f32.xlu2 %v72_v47 }
  0xa4   :  { %109 = vadd.xlane.f32.xlu2 %v108_v50 }
  0xff   :  { %v66_v52 = vpop.xlane.xlu1 %65 }
 0x100   :  { %138 = vlog2.f32 %v66_v52 }
 0x106   :  { %v139_v53 = vpop.eup %138 }
 0x107   :  { %v76_v54 = vmul.f32 0.6931472, %v139_v53  ;;  %v70_v55 = vpop.xlane.xlu2 %69  ;;  %v106_v56 = vpop.xlane.xlu1 %105 }
 0x108   :  { %140 = vlog2.f32 %v70_v55  ;;  %112 = vst.msk [vmem:[%s239_s2 + $0x8] sm:$0xff] %vm84_vm2, %v106_v56 }
 0x109   :  { %v81_v57 = vadd.f32 %v76_v54, %v194_v12 }
 0x10b   :  { %85 = vst.msk [vmem:[%s238_s1] sm:$0xff] %vm84_vm2, %v81_v57 }
 0x10e   :  { %v141_v58 = vpop.eup %140 }
 0x10f   :  { %v78_v59 = vmul.f32 0.6931472, %v141_v58  ;;  %v74_v60 = vpop.xlane.xlu2 %73 }
 0x110   :  { %142 = vlog2.f32 %v74_v60 }
 0x111   :  { %v82_v61 = vadd.f32 %v78_v59, %v40_v22 }
 0x113   :  { %86 = vst.msk [vmem:[%s238_s1 + $0x8] sm:$0xff] %vm84_vm2, %v82_v61 }
 0x116   :  { %v143_v62 = vpop.eup %142 }
 0x117   :  { %v80_v63 = vmul.f32 0.6931472, %v143_v62  ;;  %v110_v0 = vpop.xlane.xlu2 %109 }
 0x118   :  { %113 = vst.msk [vmem:[%s239_s2 + $0x10] sm:$0xff] %vm84_vm2, %v110_v0 }
 0x119   :  { %v83_v1 = vadd.f32 %v80_v63, %v198_v20 }
 0x11b   :  { %87 = vst.msk [vmem:[%s238_s1 + $0x10] sm:$0xff] %vm84_vm2, %v83_v1 }
 0x11c   :  { %122 = vsyncpa [#allocation6], 1 }

</bundles_post_ra>
